<compile_context>
chip_gen: v7x
topology: tpu7x:2x2x1
jax: 0.10.0
libtpu: 0.0.40
codegen_flags: <defaults>
</compile_context>

<pallas_src>
import jax
import jax.numpy as jnp
from jax.experimental import pallas as pl
from jax.experimental.pallas import tpu as pltpu


def _round_up(n, m):
    return ((n + m - 1) // m) * m


def _cdiv(a, b):
    return -(-a // b)


def _mlp_kernel(x_ref, w1_ref, b1_ref, w2_ref, b2_ref, wh_ref, bh_ref, out_ref):
    w_dtype = w1_ref.dtype  # MXU input dtype (bf16 by default)

    # fc1 + ReLU (cast x f32 -> bf16 in-kernel; accumulate + elementwise in f32)
    x = x_ref[...].astype(w_dtype)
    h1 = jnp.dot(x, w1_ref[...], preferred_element_type=jnp.float32)
    h1 = jnp.maximum(h1 + b1_ref[...], 0.0)

    # fc2 + ReLU
    h2 = jnp.dot(h1.astype(w_dtype), w2_ref[...], preferred_element_type=jnp.float32)
    h2 = jnp.maximum(h2 + b2_ref[...], 0.0)

    # fused policy+value head (padded to 32 lanes)
    out = jnp.dot(h2.astype(w_dtype), wh_ref[...], preferred_element_type=jnp.float32)
    out_ref[...] = (out + bh_ref[...]).astype(out_ref.dtype)


def _choose_tiling(batch, block_rows):
    """Adaptive row tiling: big tiles, minimal batch-pad waste, even tile count
    (when >1) so v7x's two TensorCores get balanced work."""
    num_tiles = max(1, _cdiv(batch, block_rows))
    if num_tiles > 1 and num_tiles % 2:
        num_tiles += 1
    tb = _round_up(_cdiv(batch, num_tiles), 8)
    return tb, tb * num_tiles, num_tiles


def soccer_policy_forward(x, params, *, output_size=20, block_rows=1024):
    """Forward pass: returns (policy, value), matching the PyTorch module."""
    B, in_features = x.shape
    k_dim, hidden = params["w1"].shape
    head_pad = params["wh"].shape[1]
    assert in_features == k_dim, (in_features, k_dim)

    tb, b_pad, nb = _choose_tiling(B, block_rows)

    # Only pad rows when the batch doesn't split evenly into tiles (no full
    # feature-axis pad / dtype-convert pass any more; the kernel casts in VMEM).
    x_in = x if b_pad == B else jnp.pad(x, ((0, b_pad - B), (0, 0)))

    flops = 2 * b_pad * hidden * (k_dim + hidden + head_pad)
    bytes_accessed = (
        x_in.size * x_in.dtype.itemsize
        + sum(params[k].size * params[k].dtype.itemsize
              for k in ("w1", "b1", "w2", "b2", "wh", "bh"))
        + b_pad * head_pad * 4
    )

    out = pl.pallas_call(
        _mlp_kernel,
        out_shape=jax.ShapeDtypeStruct((b_pad, head_pad), jnp.float32),
        grid_spec=pltpu.PrefetchScalarGridSpec(
            num_scalar_prefetch=0,
            grid=(nb,),
            in_specs=[
                pl.BlockSpec((tb, k_dim), lambda i: (i, 0)),        # x tile (K=44 ok: full dim)
                pl.BlockSpec((k_dim, hidden), lambda i: (0, 0)),    # w1 (VMEM-resident)
                pl.BlockSpec((1, hidden), lambda i: (0, 0)),        # b1
                pl.BlockSpec((hidden, hidden), lambda i: (0, 0)),   # w2
                pl.BlockSpec((1, hidden), lambda i: (0, 0)),        # b2
                pl.BlockSpec((hidden, head_pad), lambda i: (0, 0)), # fused head w
                pl.BlockSpec((1, head_pad), lambda i: (0, 0)),      # fused head b
            ],
            out_specs=pl.BlockSpec((tb, head_pad), lambda i: (i, 0)),
        ),
        compiler_params=pltpu.CompilerParams(
            dimension_semantics=("parallel",)),
        cost_estimate=pl.CostEstimate(
            flops=flops, transcendentals=0, bytes_accessed=bytes_accessed),
    )(x_in, params["w1"], params["b1"], params["w2"], params["b2"],
      params["wh"], params["bh"])

    policy = out[:B, :output_size]
    value = out[:B, output_size:output_size + 1]
    return policy, value


def init_params(key, input_size=44, hidden_size=128, output_size=20,
                weight_dtype=jnp.bfloat16):
    """nn.Linear-style U(-1/sqrt(fan_in), +1/sqrt(fan_in)) init.

    Weights are stored transposed (in_features, out_features). The policy and
    value heads are fused and zero-padded to 32 output lanes. Weights are cast
    to `weight_dtype` (bf16 by default); biases stay f32.
    """
    def linear(k, fan_in, fan_out):
        kw, kb = jax.random.split(k)
        bound = 1.0 / jnp.sqrt(jnp.float32(fan_in))
        w = jax.random.uniform(kw, (fan_in, fan_out), jnp.float32, -bound, bound)
        b = jax.random.uniform(kb, (1, fan_out), jnp.float32, -bound, bound)
        return w, b

    k1, k2, k3, k4 = jax.random.split(key, 4)
    w1, b1 = linear(k1, input_size, hidden_size)
    w2, b2 = linear(k2, hidden_size, hidden_size)
    w3, b3 = linear(k3, hidden_size, output_size)
    wv, bv = linear(k4, hidden_size, 1)

    head = output_size + 1
    head_pad = _round_up(head, 32)

    wh = jnp.concatenate([w3, wv], axis=1)                              # (H, 21)
    whp = jnp.zeros((hidden_size, head_pad), jnp.float32).at[:, :head].set(wh)
    bh = jnp.concatenate([b3, bv], axis=1)
    bhp = jnp.zeros((1, head_pad), jnp.float32).at[:, :head].set(bh)

    return {
        "w1": w1.astype(weight_dtype), "b1": b1,
        "w2": w2.astype(weight_dtype), "b2": b2,
        "wh": whp.astype(weight_dtype), "bh": bhp,
    }


def _ref_forward(x, params, output_size=20):
    """Pure-JAX reference using the same bf16-quantized weights/activations."""
    wd = params["w1"].dtype
    hi = jax.lax.Precision.HIGHEST

    def q(a):  # quantize to the kernel's matmul-input dtype, back to f32
        return a.astype(wd).astype(jnp.float32)

    w1 = params["w1"].astype(jnp.float32)
    w2 = params["w2"].astype(jnp.float32)
    wh = params["wh"].astype(jnp.float32)

    h1 = jnp.maximum(jnp.dot(q(x), w1, precision=hi) + params["b1"], 0.0)
    h2 = jnp.maximum(jnp.dot(q(h1), w2, precision=hi) + params["b2"], 0.0)
    out = jnp.dot(q(h2), wh, precision=hi) + params["bh"]
    return out[:, :output_size], out[:, output_size:output_size + 1]


if __name__ == "__main__":
    key = jax.random.PRNGKey(0)
    pkey, xkey = jax.random.split(key)

    input_size, hidden_size, output_size = 44, 128, 20
    params = init_params(pkey, input_size, hidden_size, output_size)

    # (batch, block_rows): single exact tile; single padded tile (odd batch);
    # multi-tile grid (exercises even-nb split + trailing-row padding).
    for batch, block_rows in ((8, 1024), (37, 1024), (40, 16)):
        x = jax.random.normal(jax.random.fold_in(xkey, batch),
                              (batch, input_size), jnp.float32)

        policy, value = soccer_policy_forward(
            x, params, output_size=output_size, block_rows=block_rows)
        jax.block_until_ready((policy, value))

        p_ref, v_ref = _ref_forward(x, params, output_size)

        assert policy.shape == (batch, output_size), policy.shape
        assert value.shape == (batch, 1), value.shape
        assert jnp.allclose(policy, p_ref, atol=2e-3, rtol=2e-3)
        assert jnp.allclose(value, v_ref, atol=2e-3, rtol=2e-3)

    print("KERNEL_OK")
</pallas_src>

<mosaic_0001>
module attributes {stable_mosaic.version = 11 : i64} {
  func.func @_mlp_kernel(%arg0: i32, %arg1: memref<8x44xf32, #tpu.memory_space<vmem>>, %arg2: memref<44x128xbf16, #tpu.memory_space<vmem>>, %arg3: memref<1x128xf32, #tpu.memory_space<vmem>>, %arg4: memref<128x128xbf16, #tpu.memory_space<vmem>>, %arg5: memref<1x128xf32, #tpu.memory_space<vmem>>, %arg6: memref<128x32xbf16, #tpu.memory_space<vmem>>, %arg7: memref<1x32xf32, #tpu.memory_space<vmem>>, %arg8: memref<8x32xf32, #tpu.memory_space<vmem>>) attributes {dimension_semantics = [#tpu.dimension_semantics<parallel>], iteration_bounds = array<i64: 1>, scalar_prefetch = 0 : i64, scratch_operands = 0 : i64, tpu.core_type = #tpu.core_type<tc>, window_params = [{transform_indices = @transform_0, window_bounds = array<i64: 8, 44>}, {pipeline_mode = #tpu.pipeline_mode<synchronous>, transform_indices = @transform_1, window_bounds = array<i64: 44, 128>}, {pipeline_mode = #tpu.pipeline_mode<synchronous>, transform_indices = @transform_2, window_bounds = array<i64: 1, 128>}, {pipeline_mode = #tpu.pipeline_mode<synchronous>, transform_indices = @transform_3, window_bounds = array<i64: 128, 128>}, {pipeline_mode = #tpu.pipeline_mode<synchronous>, transform_indices = @transform_4, window_bounds = array<i64: 1, 128>}, {pipeline_mode = #tpu.pipeline_mode<synchronous>, transform_indices = @transform_5, window_bounds = array<i64: 128, 32>}, {pipeline_mode = #tpu.pipeline_mode<synchronous>, transform_indices = @transform_6, window_bounds = array<i64: 1, 32>}, {transform_indices = @transform_7, window_bounds = array<i64: 8, 32>}]} {
    %c0 = arith.constant 0 : index
    %c0_0 = arith.constant 0 : index
    %0 = vector.load %arg1[%c0, %c0_0] : memref<8x44xf32, #tpu.memory_space<vmem>>, vector<8x44xf32>
    %1 = arith.truncf %0 : vector<8x44xf32> to vector<8x44xbf16>
    %c0_1 = arith.constant 0 : index
    %c0_2 = arith.constant 0 : index
    %2 = vector.load %arg2[%c0_1, %c0_2] : memref<44x128xbf16, #tpu.memory_space<vmem>>, vector<44x128xbf16>
    %cst = arith.constant dense<0.000000e+00> : vector<8x128xf32>
    %3 = tpu.matmul %1, %2, %cst {dimension_numbers = #tpu.dot_dimension_numbers<[1], [0], [0], [1], [0, 0, 1, 1], [], []>} : vector<8x44xbf16>, vector<44x128xbf16>, vector<8x128xf32> -> vector<8x128xf32>
    %c0_3 = arith.constant 0 : index
    %c0_4 = arith.constant 0 : index
    %4 = vector.load %arg3[%c0_3, %c0_4] : memref<1x128xf32, #tpu.memory_space<vmem>>, vector<1x128xf32>
    %5 = vector.broadcast %4 : vector<1x128xf32> to vector<8x128xf32>
    %6 = arith.addf %3, %5 : vector<8x128xf32>
    %cst_5 = arith.constant 0.000000e+00 : f32
    %7 = vector.broadcast %cst_5 : f32 to vector<8x128xf32>
    %8 = arith.maximumf %6, %7 : vector<8x128xf32>
    %9 = arith.truncf %8 : vector<8x128xf32> to vector<8x128xbf16>
    %c0_6 = arith.constant 0 : index
    %c0_7 = arith.constant 0 : index
    %10 = vector.load %arg4[%c0_6, %c0_7] : memref<128x128xbf16, #tpu.memory_space<vmem>>, vector<128x128xbf16>
    %cst_8 = arith.constant dense<0.000000e+00> : vector<8x128xf32>
    %11 = tpu.matmul %9, %10, %cst_8 {dimension_numbers = #tpu.dot_dimension_numbers<[1], [0], [0], [1], [0, 0, 1, 1], [], []>} : vector<8x128xbf16>, vector<128x128xbf16>, vector<8x128xf32> -> vector<8x128xf32>
    %c0_9 = arith.constant 0 : index
    %c0_10 = arith.constant 0 : index
    %12 = vector.load %arg5[%c0_9, %c0_10] : memref<1x128xf32, #tpu.memory_space<vmem>>, vector<1x128xf32>
    %13 = vector.broadcast %12 : vector<1x128xf32> to vector<8x128xf32>
    %14 = arith.addf %11, %13 : vector<8x128xf32>
    %cst_11 = arith.constant 0.000000e+00 : f32
    %15 = vector.broadcast %cst_11 : f32 to vector<8x128xf32>
    %16 = arith.maximumf %14, %15 : vector<8x128xf32>
    %17 = arith.truncf %16 : vector<8x128xf32> to vector<8x128xbf16>
    %c0_12 = arith.constant 0 : index
    %c0_13 = arith.constant 0 : index
    %18 = vector.load %arg6[%c0_12, %c0_13] : memref<128x32xbf16, #tpu.memory_space<vmem>>, vector<128x32xbf16>
    %cst_14 = arith.constant dense<0.000000e+00> : vector<8x32xf32>
    %19 = tpu.matmul %17, %18, %cst_14 {dimension_numbers = #tpu.dot_dimension_numbers<[1], [0], [0], [1], [0, 0, 1, 1], [], []>} : vector<8x128xbf16>, vector<128x32xbf16>, vector<8x32xf32> -> vector<8x32xf32>
    %c0_15 = arith.constant 0 : index
    %c0_16 = arith.constant 0 : index
    %20 = vector.load %arg7[%c0_15, %c0_16] : memref<1x32xf32, #tpu.memory_space<vmem>>, vector<1x32xf32>
    %21 = vector.broadcast %20 : vector<1x32xf32> to vector<8x32xf32>
    %22 = arith.addf %19, %21 : vector<8x32xf32>
    %c0_17 = arith.constant 0 : index
    %c0_18 = arith.constant 0 : index
    %23 = vector.load %arg8[%c0_17, %c0_18] : memref<8x32xf32, #tpu.memory_space<vmem>>, vector<8x32xf32>
    tpu.vector_store %arg8[%c0_17, %c0_18], %22 {strides = array<i32>} : memref<8x32xf32, #tpu.memory_space<vmem>>, vector<8x32xf32>,
    return
  }
  func.func @transform_0(%arg0: i32) -> (i32, i32) {
    %c0_i32 = arith.constant 0 : i32
    %c0_i32_0 = arith.constant 0 : i32
    return %arg0, %c0_i32 : i32, i32
  }
  func.func @transform_1(%arg0: i32) -> (i32, i32) {
    %c0_i32 = arith.constant 0 : i32
    %c0_i32_0 = arith.constant 0 : i32
    %c0_i32_1 = arith.constant 0 : i32
    return %c0_i32, %c0_i32_0 : i32, i32
  }
  func.func @transform_2(%arg0: i32) -> (i32, i32) {
    %c0_i32 = arith.constant 0 : i32
    %c0_i32_0 = arith.constant 0 : i32
    %c0_i32_1 = arith.constant 0 : i32
    return %c0_i32, %c0_i32_0 : i32, i32
  }
  func.func @transform_3(%arg0: i32) -> (i32, i32) {
    %c0_i32 = arith.constant 0 : i32
    %c0_i32_0 = arith.constant 0 : i32
    %c0_i32_1 = arith.constant 0 : i32
    return %c0_i32, %c0_i32_0 : i32, i32
  }
  func.func @transform_4(%arg0: i32) -> (i32, i32) {
    %c0_i32 = arith.constant 0 : i32
    %c0_i32_0 = arith.constant 0 : i32
    %c0_i32_1 = arith.constant 0 : i32
    return %c0_i32, %c0_i32_0 : i32, i32
  }
  func.func @transform_5(%arg0: i32) -> (i32, i32) {
    %c0_i32 = arith.constant 0 : i32
    %c0_i32_0 = arith.constant 0 : i32
    %c0_i32_1 = arith.constant 0 : i32
    return %c0_i32, %c0_i32_0 : i32, i32
  }
  func.func @transform_6(%arg0: i32) -> (i32, i32) {
    %c0_i32 = arith.constant 0 : i32
    %c0_i32_0 = arith.constant 0 : i32
    %c0_i32_1 = arith.constant 0 : i32
    return %c0_i32, %c0_i32_0 : i32, i32
  }
  func.func @transform_7(%arg0: i32) -> (i32, i32) {
    %c0_i32 = arith.constant 0 : i32
    %c0_i32_0 = arith.constant 0 : i32
    return %arg0, %c0_i32 : i32, i32
  }
}

</mosaic_0001>

<bundles_post_ra>
// kernel: tpu_custom_call.1
= control target key start
LH: loop header
LB: loop body
LE: loop exit
PB: predicated region body
PF: predicated region fallthrough
CT: control target
= control target key end

     0   :  { %12 = vsyncpa [#allocation3], 0  ;;  %s688_s0 = inlined_call_operand.hbm [shape: f32[8,44], index: 0, kind: input, shape index: {}]   ;;  %s689_s1 = inlined_call_operand.vmem [shape: bf16[44,128], index: 1, kind: input, shape index: {}]   ;;  %s690_s2 = inlined_call_operand.vmem [shape: f32[1,128], index: 2, kind: input, shape index: {}]   ;;  %s691_s3 = inlined_call_operand.vmem [shape: bf16[128,128], index: 3, kind: input, shape index: {}]   ;;  %s692_s4 = inlined_call_operand.vmem [shape: f32[1,128], index: 4, kind: input, shape index: {}]   ;;  %s693_s5 = inlined_call_operand.vmem [shape: bf16[128,32], index: 5, kind: input, shape index: {}]   ;;  %s694_s6 = inlined_call_operand.vmem [shape: f32[1,32], index: 6, kind: input, shape index: {}]   ;;  %s695_s7 = inlined_call_operand.hbm [shape: f32[8,32], index: 7, kind: output, shape index: {}]  }
   0x1   :  { %13 = vsyncpa [#allocation4], 0  ;;  %s529_s24 = smov [#allocation2]   ;;  %s481_s28 = scalar_lea.hbm %s688_s0, 128 }
   0x2   :  { %s20_s25 = sshll.u32 %s529_s24, 4  ;;  %p482_p0 = scmp.ne.s32.totalorder %s688_s0, %s481_s28  ;;  %s21_s25 = int_to_ptr.vmem [resolvable:$true] %s20_s25 }
   0x3   :  { %p485_p1 = scmp.lt.u32.totalorder %s481_s28, %s688_s0 }
   0x5   :  { %p487_p2 = pnand %p485_p1, %p482_p0 }
   0x7   :  { %490 = shalt.err (!%p487_p2)
}
   0x8   :  { %s491_s10 = scalar_lea.vmem %s21_s25, 128  ;;  %p496_p4 = scmp.lt.s32.totalorder %s21_s25, %s21_s25 }
   0x9   :  { %p492_p3 = scmp.ne.s32.totalorder %s21_s25, %s491_s10  ;;  %p497_p5 = scmp.lt.s32.totalorder %s491_s10, %s491_s10 }
   0xb   :  { %p498_p6 = por %p497_p5, %p496_p4 }
   0xd   :  { %p499_p7 = pnand %p498_p6, %p492_p3 }
   0xf   :  { %502 = shalt.err (!%p499_p7)
}
  0x10   :  { %23 = dma.hbm_to_vmem [thread:$0]  %s688_s0, 128, %s21_s25, [#allocation3]  }
  0x11   :  { %525 = dma.done.wait [#allocation3], 128  }
  0x12   :  { %526 = vsyncadd [#allocation3], 4294967168  ;;  %v530_v0 = vmov 0.0   ;;  %vm531_vm0 = vmmov 0   ;;  %v462_v1 = vld [vmem:[%s689_s1] sm:$0xff]   ;;  %v463_v2 = vld [vmem:[%s689_s1 + $0x8] sm:$0xff]  }
  0x13   :  { %408 = vmatprep.subr.bf16.mxu0 %v530_v0  ;;  %414 = vmatprep.mubr.msk.bf16.mxu0 %vm531_vm0, %v530_v0  ;;  %v464_v3 = vld [vmem:[%s689_s1 + $0x10] sm:$0x3f]   ;;  %vm76_vm1 = vcmask 1045504   ;;  %v465_v4 = vld [vmem:[%s691_s3] sm:$0xff]   ;;  %v466_v6 = vld [vmem:[%s691_s3 + $0x8] sm:$0xff]   ;;  %vm72_vm2 = vcmask 359424  }
  0x14   :  { %418 = vmatprep.subr.bf16.mxu1 %v530_v0  ;;  %434 = vmatprep.mubr.msk.bf16.mxu1 %vm531_vm0, %v530_v0  ;;  %v40_v5 = vld [vmem:[#allocation2] sm:$0xff]  ;;  %v78_v7 = vsel %vm76_vm1, %v464_v3, 0  ;;  %v467_v9 = vld [vmem:[%s691_s3 + $0x10] sm:$0xff]   ;;  %v468_v10 = vld [vmem:[%s691_s3 + $0x18] sm:$0xff]   ;;  %s532_s28 = smov [#allocation5]   ;;  %vm346_vm3 = vcmask 261120  }
  0x15   :  { %409 = vmatpush3.bf16.msra.mxu0 %v462_v1  ;;  %419 = vmatpush3.bf16.msra.mxu1 %v465_v4  ;;  %v41_v8 = vpack.c.bf16 %v40_v5, %v40_v5  ;;  %v469_v11 = vld [vmem:[%s691_s3 + $0x20] sm:$0xff]   ;;  %v470_v12 = vld [vmem:[%s691_s3 + $0x28] sm:$0xff]   ;;  %v471_v13 = vld [vmem:[%s691_s3 + $0x30] sm:$0xff]   ;;  %s354_s29 = sshll.u32 %s532_s28, 4  ;;  %s355_s29 = int_to_ptr.vmem [resolvable:$true] %s354_s29 }
  0x16   :  { %410 = vmatprep.subr.bf16.mxu0 %v530_v0  ;;  %420 = vmatprep.subr.bf16.mxu1 %v530_v0  ;;  %v472_v14 = vld [vmem:[%s691_s3 + $0x38] sm:$0xff]   ;;  %v473_v15 = vld [vmem:[%s693_s5] sm:$0xff]   ;;  %v474_v16 = vld [vmem:[%s693_s5 + $0x8] sm:$0xff]   ;;  %p508_p9 = scmp.lt.s32.totalorder %s355_s29, %s355_s29 }
  0x17   :  { %v475_v17 = vld [vmem:[%s693_s5 + $0x10] sm:$0xff]   ;;  %v476_v18 = vld [vmem:[%s693_s5 + $0x18] sm:$0xff]   ;;  %v477_v19 = vld [vmem:[%s693_s5 + $0x20] sm:$0xff]  }
  0x18   :  { %v478_v20 = vld [vmem:[%s693_s5 + $0x28] sm:$0xff]   ;;  %v363_v21 = vld [vmem:[%s690_s2] ss:$0 sm:$0xff]  ;;  %v479_v29 = vld [vmem:[%s693_s5 + $0x30] sm:$0xff]  }
  0x19   :  { %411 = vmatpush3.bf16.msra.mxu0 %v463_v2  ;;  %421 = vmatpush3.bf16.msra.mxu1 %v466_v6  ;;  %v480_v30 = vld [vmem:[%s693_s5 + $0x38] sm:$0xff]   ;;  %v368_v31 = vld [vmem:[%s692_s4] ss:$0 sm:$0xff]  ;;  %s503_s4 = scalar_lea.vmem %s355_s29, 128 }
  0x1a   :  { %412 = vmatprep.subr.bf16.mxu0 %v530_v0  ;;  %422 = vmatprep.subr.bf16.mxu1 %v530_v0  ;;  %v377_v39 = vld [vmem:[%s694_s6] ss:$0 sm:$0xff]  ;;  %p504_p8 = scmp.ne.s32.totalorder %s355_s29, %s503_s4  ;;  %p509_p10 = scmp.lt.s32.totalorder %s503_s4, %s503_s4 }
  0x1c   :  { %p510_p11 = por %p509_p10, %p508_p9 }
  0x1d   :  { %413 = vmatpush3.bf16.msra.mxu0 %v78_v7  ;;  %423 = vmatpush3.bf16.msra.mxu1 %v467_v9 }
  0x1e   :  { %438 = vmatprep.subr.bf16.mxu0 %v530_v0  ;;  %424 = vmatprep.subr.bf16.mxu1 %v530_v0  ;;  %p511_p12 = pnand %p510_p11, %p504_p8 }
  0x20   :  { %415 = vmatmul.mubr.msk.bf16.vlgmr.msra.gmra.mrb[0].mxu0 %vm72_vm2, %v41_v8 }
  0x21   :  { %454 = vmatprep.mubr.msk.bf16.mxu0 %vm531_vm0, %v530_v0  ;;  %425 = vmatpush3.bf16.msra.mxu1 %v468_v10 }
  0x22   :  { %426 = vmatprep.subr.bf16.mxu1 %v530_v0  ;;  %439 = vmatpush3.bf16.msra.mxu0 %v473_v15 }
  0x23   :  { %440 = vmatprep.subr.bf16.mxu0 %v530_v0 }
  0x25   :  { %427 = vmatpush3.bf16.msra.mxu1 %v469_v11 }
  0x26   :  { %428 = vmatprep.subr.bf16.mxu1 %v530_v0  ;;  %441 = vmatpush3.bf16.msra.mxu0 %v474_v16 }
  0x27   :  { %442 = vmatprep.subr.bf16.mxu0 %v530_v0 }
  0x29   :  { %429 = vmatpush3.bf16.msra.mxu1 %v470_v12 }
  0x2a   :  { %430 = vmatprep.subr.bf16.mxu1 %v530_v0  ;;  %443 = vmatpush3.bf16.msra.mxu0 %v475_v17 }
  0x2b   :  { %444 = vmatprep.subr.bf16.mxu0 %v530_v0 }
  0x2d   :  { %431 = vmatpush3.bf16.msra.mxu1 %v471_v13 }
  0x2e   :  { %432 = vmatprep.subr.bf16.mxu1 %v530_v0  ;;  %445 = vmatpush3.bf16.msra.mxu0 %v476_v18 }
  0x2f   :  { %446 = vmatprep.subr.bf16.mxu0 %v530_v0 }
  0x31   :  { %433 = vmatpush3.bf16.msra.mxu1 %v472_v14 }
  0x32   :  { %447 = vmatpush3.bf16.msra.mxu0 %v477_v19 }
  0x33   :  { %448 = vmatprep.subr.bf16.mxu0 %v530_v0 }
  0x36   :  { %449 = vmatpush3.bf16.msra.mxu0 %v478_v20 }
  0x37   :  { %450 = vmatprep.subr.bf16.mxu0 %v530_v0 }
  0x3a   :  { %451 = vmatpush3.bf16.msra.mxu0 %v479_v29 }
  0x3b   :  { %452 = vmatprep.subr.bf16.mxu0 %v530_v0 }
  0x3e   :  { %453 = vmatpush3.bf16.msra.mxu0 %v480_v30 }
  0xf3   :  { %v114_v22 = vpop.f32.mrb[0].mxu0 }
  0xf4   :  { %v115_v23 = vadd.f32 %v363_v21, %v114_v22  ;;  %v416_v24 = vpop.f32.mrb[1].mxu0 }
  0xf5   :  { %v117_v25 = vpop.f32.mrb[2].mxu0 }
  0xf6   :  { %v120_v26 = vmax.f32 %v115_v23, 0.0  ;;  %v417_v27 = vpop.f32.mrb[3].mxu0 }
  0xf8   :  { %v121_v28 = vpack.c.bf16 %v120_v26, %v120_v26 }
  0xfa   :  { %435 = vmatmul.mubr.bf16.vlgmr.msra.gmra.mrb[0].mxu1 %v121_v28 }
 0x1cd   :  { %v227_v32 = vpop.f32.mrb[0].mxu1 }
 0x1ce   :  { %v228_v33 = vadd.f32 %v368_v31, %v227_v32  ;;  %v436_v34 = vpop.f32.mrb[1].mxu1 }
 0x1cf   :  { %v230_v35 = vpop.f32.mrb[2].mxu1 }
 0x1d0   :  { %v233_v36 = vmax.f32 %v228_v33, 0.0  ;;  %v437_v37 = vpop.f32.mrb[3].mxu1 }
 0x1d2   :  { %v234_v38 = vpack.c.bf16 %v233_v36, %v233_v36 }
 0x1d4   :  { %455 = vmatmul.mubr.bf16.vlgmr.msra.gmra.mrb[4].mxu0 %v234_v38 }
 0x2a7   :  { %v340_v40 = vpop.f32.mrb[4].mxu0 }
 0x2a8   :  { %v341_v41 = vadd.f32 %v377_v39, %v340_v40  ;;  %v456_v42 = vpop.f32.mrb[5].mxu0 }
 0x2a9   :  { %v343_v43 = vpop.f32.mrb[6].mxu0 }
 0x2aa   :  { %v457_v44 = vpop.f32.mrb[7].mxu0  ;;  %347 = vst.msk [vmem:[#allocation5] sm:$0xff] %vm346_vm3, %v341_v41 }
 0x2ab   :  { %514 = shalt.err (!%p511_p12)
}
 0x2ac   :  { %s515_s6 = scalar_lea.hbm %s695_s7, 128 }
 0x2ad   :  { %p516_p13 = scmp.ne.s32.totalorder %s695_s7, %s515_s6  ;;  %p519_p0 = scmp.lt.u32.totalorder %s515_s6, %s695_s7 }
 0x2af   :  { %p521_p1 = pnand %p519_p0, %p516_p13 }
 0x2b1   :  { %524 = shalt.err (!%p521_p1)
}
 0x2b2   :  { %357 = dma.vmem_to_hbm [thread:$0]  %s355_s29, 128, %s695_s7, [#allocation4]  }
 0x2b3   :  { %527 = dma.done.wait [#allocation4], 128  }
 0x2b4   :  { %528 = vsyncadd [#allocation4], 4294967168 }
 0x2b5   :  { %361 = vsyncpa [#allocation3], 1 }
 0x2b6   :  { %362 = vsyncpa [#allocation4], 1 }

</bundles_post_ra>
